<compile_context>
chip_gen: v7x
topology: tpu7x:2x2x1
jax: 0.10.0
libtpu: 0.0.40
codegen_flags: <defaults>
</compile_context>

<pallas_src>
import functools

import jax
import jax.numpy as jnp
from jax.experimental import pallas as pl
from jax.experimental.pallas import tpu as pltpu


def _round_up(n, m):
    return ((n + m - 1) // m) * m


def _topo_kernel(n_valid, p_dim,
                 x_ref, w1_ref, b1_ref, w2_ref, b2_ref,
                 w3_ref, b3_ref, w4_ref, b4_ref,
                 y_ref, pers_ref):
    cdt = w1_ref.dtype                     # MXU operand dtype (bf16 or f32)
    tm = x_ref.shape[0]

    x = x_ref[...]                         # f32 rows; residual term stays f32

    # topology_encoder: Linear -> ReLU -> Linear (+ fused birth-death column).
    # Matmul operands cast to `cdt`; accumulation, biases, ReLU stay f32.
    h1 = jnp.dot(x.astype(cdt), w1_ref[...],
                 preferred_element_type=jnp.float32) + b1_ref[...]
    h1 = jnp.maximum(h1, 0.0)
    topo_ext = jnp.dot(h1.astype(cdt), w2_ref[...],
                       preferred_element_type=jnp.float32) + b2_ref[...]
    topo = topo_ext[:, :p_dim]             # encoder output (tm, P)

    # topology_decoder: Linear -> ReLU -> Linear
    d1 = jnp.dot(topo.astype(cdt), w3_ref[...],
                 preferred_element_type=jnp.float32) + b3_ref[...]
    d1 = jnp.maximum(d1, 0.0)
    topo_out = jnp.dot(d1.astype(cdt), w4_ref[...],
                       preferred_element_type=jnp.float32) + b4_ref[...]

    y_ref[...] = (x + topo_out).astype(y_ref.dtype)

    # Persistence head: column P of topo_ext already holds
    # births - deaths + 0.1 (folded into w2_ext / b2_ext in the wrapper).
    per_row = jnp.maximum(topo_ext[:, p_dim:p_dim + 1], 0.0)      # (tm, 1)

    # Mask rows that are only padding (N was rounded up to a tile multiple).
    row = pl.program_id(0) * tm + jax.lax.broadcasted_iota(jnp.int32, (tm, 1), 0)
    per_row = jnp.where(row < n_valid, per_row, 0.0)
    partial = jnp.sum(per_row)

    # Lane-dense (8,128) block: one unmasked vreg store per grid step.
    pers_ref[...] = jnp.full(pers_ref.shape, partial, dtype=pers_ref.dtype)


def topological_layer_forward(x, params, *, tile_m=2048,
                              compute_dtype=jnp.bfloat16):
    """x: (B, T, dim) float32.  Returns (x + topo_out, persistence_loss)."""
    B, T, dim = x.shape
    P = params["w1"].shape[1]
    N = B * T

    # Big row tiles; clamp to the (8-rounded) problem size, then ensure the
    # grid has at least 2 steps so both v7x TensorCores get work.
    tile_m = max(8, min(_round_up(int(tile_m), 8), _round_up(N, 8)))
    half_rows = max(8, _round_up(-(-N // 2), 8))
    tile_m = min(tile_m, half_rows)
    n_pad = _round_up(N, tile_m)
    num_tiles = n_pad // tile_m

    # x stays f32 in HBM and in-kernel (exact residual); only matmul operands
    # are cast to compute_dtype inside the kernel.
    x2 = x.reshape(N, dim).astype(jnp.float32)
    if n_pad != N:
        x2 = jnp.pad(x2, ((0, n_pad - N), (0, 0)))

    # Fold the birth/death head into the second encoder matmul.
    #   col P of w2_ext  = w2 @ (wbd[:,0] - wbd[:,1])
    #   col P of b2_ext  = b2 @ (wbd[:,0] - wbd[:,1]) + (bbd[0]-bbd[1]) + 0.1
    # so topo_ext[:, P] == births - deaths + 0.1 exactly.
    wbd_vec = (params["wbd"][:, 0] - params["wbd"][:, 1]).astype(jnp.float32)
    bbd_const = (params["bbd"][0] - params["bbd"][1]).astype(jnp.float32) + 0.1
    p_ext = _round_up(P + 1, 128)
    w2_ext = jnp.zeros((P, p_ext), jnp.float32)
    w2_ext = w2_ext.at[:, :P].set(params["w2"].astype(jnp.float32))
    w2_ext = w2_ext.at[:, P].set(params["w2"].astype(jnp.float32) @ wbd_vec)
    b2_ext = jnp.zeros((1, p_ext), jnp.float32)
    b2_ext = b2_ext.at[0, :P].set(params["b2"].astype(jnp.float32))
    b2_ext = b2_ext.at[0, P].set(params["b2"].astype(jnp.float32) @ wbd_vec + bbd_const)

    w = lambda name: params[name].astype(compute_dtype)          # MXU operands
    b = lambda name: params[name].reshape(1, -1).astype(jnp.float32)  # f32 bias
    weight_args = (w("w1"), b("b1"),
                   w2_ext.astype(compute_dtype), b2_ext,
                   w("w3"), b("b3"), w("w4"), b("b4"))

    # VMEM budget: double-buffered x/y/pers blocks + resident (double-buffered)
    # weights + in-kernel f32 intermediates + bf16 cast copies, 2x headroom.
    c_size = jnp.dtype(compute_dtype).itemsize
    io_bytes = 2 * (2 * tile_m * dim * 4 + 8 * 128 * 4)
    wt_bytes = 2 * sum(int(a.size) * a.dtype.itemsize for a in weight_args)
    inter_bytes = tile_m * (P + p_ext + 2 * dim) * 4          # h1/topo_ext/d1/topo_out
    inter_bytes += tile_m * (2 * dim + 2 * P) * c_size        # matmul-operand casts
    vmem_limit = int(min(48 << 20, max(8 << 20,
                                       2 * (io_bytes + wt_bytes + inter_bytes))))

    kernel = functools.partial(_topo_kernel, N, P)
    wspec = lambda shape: pl.BlockSpec(shape, lambda i: (0, 0))

    y2, pers = pl.pallas_call(
        kernel,
        out_shape=(
            jax.ShapeDtypeStruct((n_pad, dim), x.dtype),
            jax.ShapeDtypeStruct((num_tiles * 8, 128), jnp.float32),
        ),
        grid_spec=pltpu.PrefetchScalarGridSpec(
            num_scalar_prefetch=0,
            grid=(num_tiles,),
            in_specs=[
                pl.BlockSpec((tile_m, dim), lambda i: (i, 0)),   # x rows
                wspec((dim, P)),      # w1
                wspec((1, P)),        # b1
                wspec((P, p_ext)),    # w2 (+ fused birth-death column)
                wspec((1, p_ext)),    # b2 (+ fused bbd + 0.1)
                wspec((P, dim)),      # w3
                wspec((1, dim)),      # b3
                wspec((dim, dim)),    # w4
                wspec((1, dim)),      # b4
            ],
            out_specs=[
                pl.BlockSpec((tile_m, dim), lambda i: (i, 0)),   # y rows
                pl.BlockSpec((8, 128), lambda i: (i, 0)),        # pers partials
            ],
        ),
        compiler_params=pltpu.CompilerParams(
            dimension_semantics=("parallel",),
            vmem_limit_bytes=vmem_limit),
    )(x2, *weight_args)

    # Tiny final reduction: each grid step wrote its partial sum replicated
    # across one (8,128) block; divide by 8*128 and by N for the mean.
    persistence_loss = jnp.sum(pers) / (8.0 * 128.0 * N)

    y = y2[:N].reshape(B, T, dim).astype(x.dtype)
    return y, persistence_loss


def init_params(key, dim, persistence_dim):
    """Deterministic synthetic weights (same shapes as the PyTorch module)."""
    ks = jax.random.split(key, 10)
    u = lambda k, shape, fan_in: jax.random.uniform(
        k, shape, jnp.float32, -1.0 / jnp.sqrt(fan_in), 1.0 / jnp.sqrt(fan_in))
    P = persistence_dim
    return {
        "w1": u(ks[0], (dim, P), dim),   "b1": u(ks[1], (P,), dim),
        "w2": u(ks[2], (P, P), P),       "b2": u(ks[3], (P,), P),
        "w3": u(ks[4], (P, dim), P),     "b3": u(ks[5], (dim,), P),
        "w4": u(ks[6], (dim, dim), dim), "b4": u(ks[7], (dim,), dim),
        "wbd": u(ks[8], (P, 2), P),      "bbd": u(ks[9], (2,), P),
    }


def _reference_forward(x, p):
    """Plain-JAX f32 reference (mirrors the PyTorch module exactly)."""
    topo = jnp.maximum(x @ p["w1"] + p["b1"], 0.0) @ p["w2"] + p["b2"]
    topo_out = jnp.maximum(topo @ p["w3"] + p["b3"], 0.0) @ p["w4"] + p["b4"]
    bd = topo @ p["wbd"] + p["bbd"]
    pers = jnp.mean(jnp.maximum(bd[..., 0] - bd[..., 1] + 0.1, 0.0))
    return x + topo_out, pers


if __name__ == "__main__":
    DIM, PDIM = 32, 64
    key = jax.random.PRNGKey(0)
    kx, kp, kx2 = jax.random.split(key, 3)
    params = init_params(kp, DIM, PDIM)

    x = jax.random.normal(kx, (2, 8, DIM), dtype=jnp.float32)
    y_ref, loss_ref = _reference_forward(x, params)

    # Exactness path: f32 MXU operands, tight tolerance vs f32 reference.
    y32, loss32 = topological_layer_forward(x, params, compute_dtype=jnp.float32)
    jax.block_until_ready((y32, loss32))
    assert y32.shape == (2, 8, DIM) and loss32.shape == ()
    assert jnp.allclose(y32, y_ref, rtol=1e-5, atol=1e-5)
    assert jnp.allclose(loss32, loss_ref, rtol=1e-5, atol=2e-5)

    # Default path: bf16 MXU operands, f32 residual/elementwise; bf16-level
    # tolerance vs the f32 reference (error only enters through topo_out/bd).
    y, loss = topological_layer_forward(x, params)
    jax.block_until_ready((y, loss))
    assert jnp.allclose(y, y_ref, rtol=3e-2, atol=3e-2)
    assert jnp.allclose(loss, loss_ref, rtol=3e-2, atol=3e-2)

    # Larger, non-tile-divisible shape: exercises padding/masking and the
    # >=2-step grid clamp (two 504-row tiles over 1000 rows).
    x_big = jax.random.normal(kx2, (4, 250, DIM), dtype=jnp.float32)
    yb_ref, lb_ref = _reference_forward(x_big, params)
    y_big, loss_big = topological_layer_forward(x_big, params)
    jax.block_until_ready((y_big, loss_big))
    assert jnp.allclose(y_big, yb_ref, rtol=3e-2, atol=3e-2)
    assert jnp.allclose(loss_big, lb_ref, rtol=3e-2, atol=3e-2)

    print("KERNEL_OK")
</pallas_src>

<mosaic_0001>
module attributes {stable_mosaic.version = 11 : i64} {
  func.func @_topo_kernel(%arg0: i32, %arg1: memref<8x32xf32, #tpu.memory_space<vmem>>, %arg2: memref<32x64xf32, #tpu.memory_space<vmem>>, %arg3: memref<1x64xf32, #tpu.memory_space<vmem>>, %arg4: memref<64x128xf32, #tpu.memory_space<vmem>>, %arg5: memref<1x128xf32, #tpu.memory_space<vmem>>, %arg6: memref<64x32xf32, #tpu.memory_space<vmem>>, %arg7: memref<1x32xf32, #tpu.memory_space<vmem>>, %arg8: memref<32x32xf32, #tpu.memory_space<vmem>>, %arg9: memref<1x32xf32, #tpu.memory_space<vmem>>, %arg10: memref<8x32xf32, #tpu.memory_space<vmem>>, %arg11: memref<8x128xf32, #tpu.memory_space<vmem>>) attributes {dimension_semantics = [#tpu.dimension_semantics<parallel>], iteration_bounds = array<i64: 2>, scalar_prefetch = 0 : i64, scratch_operands = 0 : i64, tpu.core_type = #tpu.core_type<tc>, window_params = [{transform_indices = @transform_0, window_bounds = array<i64: 8, 32>}, {pipeline_mode = #tpu.pipeline_mode<synchronous>, transform_indices = @transform_1, window_bounds = array<i64: 32, 64>}, {pipeline_mode = #tpu.pipeline_mode<synchronous>, transform_indices = @transform_2, window_bounds = array<i64: 1, 64>}, {pipeline_mode = #tpu.pipeline_mode<synchronous>, transform_indices = @transform_3, window_bounds = array<i64: 64, 128>}, {pipeline_mode = #tpu.pipeline_mode<synchronous>, transform_indices = @transform_4, window_bounds = array<i64: 1, 128>}, {pipeline_mode = #tpu.pipeline_mode<synchronous>, transform_indices = @transform_5, window_bounds = array<i64: 64, 32>}, {pipeline_mode = #tpu.pipeline_mode<synchronous>, transform_indices = @transform_6, window_bounds = array<i64: 1, 32>}, {pipeline_mode = #tpu.pipeline_mode<synchronous>, transform_indices = @transform_7, window_bounds = array<i64: 32, 32>}, {pipeline_mode = #tpu.pipeline_mode<synchronous>, transform_indices = @transform_8, window_bounds = array<i64: 1, 32>}, {transform_indices = @transform_9, window_bounds = array<i64: 8, 32>}, {transform_indices = @transform_10, window_bounds = array<i64: 8, 128>}]} {
    %c0 = arith.constant 0 : index
    %c0_0 = arith.constant 0 : index
    %0 = vector.load %arg1[%c0, %c0_0] : memref<8x32xf32, #tpu.memory_space<vmem>>, vector<8x32xf32>
    %c0_1 = arith.constant 0 : index
    %c0_2 = arith.constant 0 : index
    %1 = vector.load %arg2[%c0_1, %c0_2] : memref<32x64xf32, #tpu.memory_space<vmem>>, vector<32x64xf32>
    %cst = arith.constant dense<0.000000e+00> : vector<8x64xf32>
    %2 = tpu.matmul %0, %1, %cst {dimension_numbers = #tpu.dot_dimension_numbers<[1], [0], [0], [1], [0, 0, 1, 1], [], []>} : vector<8x32xf32>, vector<32x64xf32>, vector<8x64xf32> -> vector<8x64xf32>
    %c0_3 = arith.constant 0 : index
    %c0_4 = arith.constant 0 : index
    %3 = vector.load %arg3[%c0_3, %c0_4] : memref<1x64xf32, #tpu.memory_space<vmem>>, vector<1x64xf32>
    %4 = vector.broadcast %3 : vector<1x64xf32> to vector<8x64xf32>
    %5 = arith.addf %2, %4 : vector<8x64xf32>
    %cst_5 = arith.constant 0.000000e+00 : f32
    %6 = vector.broadcast %cst_5 : f32 to vector<8x64xf32>
    %7 = arith.maximumf %5, %6 : vector<8x64xf32>
    %c0_6 = arith.constant 0 : index
    %c0_7 = arith.constant 0 : index
    %8 = vector.load %arg4[%c0_6, %c0_7] : memref<64x128xf32, #tpu.memory_space<vmem>>, vector<64x128xf32>
    %cst_8 = arith.constant dense<0.000000e+00> : vector<8x128xf32>
    %9 = tpu.matmul %7, %8, %cst_8 {dimension_numbers = #tpu.dot_dimension_numbers<[1], [0], [0], [1], [0, 0, 1, 1], [], []>} : vector<8x64xf32>, vector<64x128xf32>, vector<8x128xf32> -> vector<8x128xf32>
    %c0_9 = arith.constant 0 : index
    %c0_10 = arith.constant 0 : index
    %10 = vector.load %arg5[%c0_9, %c0_10] : memref<1x128xf32, #tpu.memory_space<vmem>>, vector<1x128xf32>
    %11 = vector.broadcast %10 : vector<1x128xf32> to vector<8x128xf32>
    %12 = arith.addf %9, %11 : vector<8x128xf32>
    %13 = vector.extract_strided_slice %12 {offsets = [0, 0], sizes = [8, 64], strides = [1, 1]} : vector<8x128xf32> to vector<8x64xf32>
    %c0_11 = arith.constant 0 : index
    %c0_12 = arith.constant 0 : index
    %14 = vector.load %arg6[%c0_11, %c0_12] : memref<64x32xf32, #tpu.memory_space<vmem>>, vector<64x32xf32>
    %cst_13 = arith.constant dense<0.000000e+00> : vector<8x32xf32>
    %15 = tpu.matmul %13, %14, %cst_13 {dimension_numbers = #tpu.dot_dimension_numbers<[1], [0], [0], [1], [0, 0, 1, 1], [], []>} : vector<8x64xf32>, vector<64x32xf32>, vector<8x32xf32> -> vector<8x32xf32>
    %c0_14 = arith.constant 0 : index
    %c0_15 = arith.constant 0 : index
    %16 = vector.load %arg7[%c0_14, %c0_15] : memref<1x32xf32, #tpu.memory_space<vmem>>, vector<1x32xf32>
    %17 = vector.broadcast %16 : vector<1x32xf32> to vector<8x32xf32>
    %18 = arith.addf %15, %17 : vector<8x32xf32>
    %cst_16 = arith.constant 0.000000e+00 : f32
    %19 = vector.broadcast %cst_16 : f32 to vector<8x32xf32>
    %20 = arith.maximumf %18, %19 : vector<8x32xf32>
    %c0_17 = arith.constant 0 : index
    %c0_18 = arith.constant 0 : index
    %21 = vector.load %arg8[%c0_17, %c0_18] : memref<32x32xf32, #tpu.memory_space<vmem>>, vector<32x32xf32>
    %cst_19 = arith.constant dense<0.000000e+00> : vector<8x32xf32>
    %22 = tpu.matmul %20, %21, %cst_19 {dimension_numbers = #tpu.dot_dimension_numbers<[1], [0], [0], [1], [0, 0, 1, 1], [], []>} : vector<8x32xf32>, vector<32x32xf32>, vector<8x32xf32> -> vector<8x32xf32>
    %c0_20 = arith.constant 0 : index
    %c0_21 = arith.constant 0 : index
    %23 = vector.load %arg9[%c0_20, %c0_21] : memref<1x32xf32, #tpu.memory_space<vmem>>, vector<1x32xf32>
    %24 = vector.broadcast %23 : vector<1x32xf32> to vector<8x32xf32>
    %25 = arith.addf %22, %24 : vector<8x32xf32>
    %26 = arith.addf %0, %25 : vector<8x32xf32>
    %c0_22 = arith.constant 0 : index
    %c0_23 = arith.constant 0 : index
    %27 = vector.load %arg10[%c0_22, %c0_23] : memref<8x32xf32, #tpu.memory_space<vmem>>, vector<8x32xf32>
    tpu.vector_store %arg10[%c0_22, %c0_23], %26 {strides = array<i32>} : memref<8x32xf32, #tpu.memory_space<vmem>>, vector<8x32xf32>,
    %28 = vector.extract_strided_slice %12 {offsets = [0, 64], sizes = [8, 1], strides = [1, 1]} : vector<8x128xf32> to vector<8x1xf32>
    %cst_24 = arith.constant 0.000000e+00 : f32
    %29 = vector.broadcast %cst_24 : f32 to vector<8x1xf32>
    %30 = arith.maximumf %28, %29 : vector<8x1xf32>
    %c8_i32 = arith.constant 8 : i32
    %31 = arith.muli %arg0, %c8_i32 : i32
    %32 = tpu.iota {dimensions = array<i32: 0>} : vector<8x1xi32>
    %33 = vector.broadcast %31 : i32 to vector<8x1xi32>
    %34 = arith.addi %33, %32 : vector<8x1xi32>
    %c16_i32 = arith.constant 16 : i32
    %35 = vector.broadcast %c16_i32 : i32 to vector<8x1xi32>
    %36 = arith.cmpi slt, %34, %35 : vector<8x1xi32>
    %cst_25 = arith.constant 0.000000e+00 : f32
    %37 = vector.broadcast %cst_25 : f32 to vector<8x1xf32>
    %38 = arith.select %36, %30, %37 : vector<8x1xi1>, vector<8x1xf32>
    %39 = vector.shape_cast %38 : vector<8x1xf32> to vector<1x8x1xf32>
    %cst_26 = arith.constant dense<0.000000e+00> : vector<1xf32>
    %40 = vector.multi_reduction <add>, %39, %cst_26 [1, 2] : vector<1x8x1xf32> to vector<1xf32>
    %41 = vector.shape_cast %40 : vector<1xf32> to vector<1x1x1xf32>
    %42 = vector.extract %41[0, 0, 0] : f32 from vector<1x1x1xf32>
    %43 = vector.broadcast %42 : f32 to vector<8x128xf32>
    %c0_27 = arith.constant 0 : index
    %c0_28 = arith.constant 0 : index
    %44 = vector.load %arg11[%c0_27, %c0_28] : memref<8x128xf32, #tpu.memory_space<vmem>>, vector<8x128xf32>
    tpu.vector_store %arg11[%c0_27, %c0_28], %43 {strides = array<i32>} : memref<8x128xf32, #tpu.memory_space<vmem>>, vector<8x128xf32>,
    return
  }
  func.func @transform_0(%arg0: i32) -> (i32, i32) {
    %c0_i32 = arith.constant 0 : i32
    %c0_i32_0 = arith.constant 0 : i32
    return %arg0, %c0_i32 : i32, i32
  }
  func.func @transform_1(%arg0: i32) -> (i32, i32) {
    %c0_i32 = arith.constant 0 : i32
    %c0_i32_0 = arith.constant 0 : i32
    %c0_i32_1 = arith.constant 0 : i32
    return %c0_i32, %c0_i32_0 : i32, i32
  }
  func.func @transform_2(%arg0: i32) -> (i32, i32) {
    %c0_i32 = arith.constant 0 : i32
    %c0_i32_0 = arith.constant 0 : i32
    %c0_i32_1 = arith.constant 0 : i32
    return %c0_i32, %c0_i32_0 : i32, i32
  }
  func.func @transform_3(%arg0: i32) -> (i32, i32) {
    %c0_i32 = arith.constant 0 : i32
    %c0_i32_0 = arith.constant 0 : i32
    %c0_i32_1 = arith.constant 0 : i32
    return %c0_i32, %c0_i32_0 : i32, i32
  }
  func.func @transform_4(%arg0: i32) -> (i32, i32) {
    %c0_i32 = arith.constant 0 : i32
    %c0_i32_0 = arith.constant 0 : i32
    %c0_i32_1 = arith.constant 0 : i32
    return %c0_i32, %c0_i32_0 : i32, i32
  }
  func.func @transform_5(%arg0: i32) -> (i32, i32) {
    %c0_i32 = arith.constant 0 : i32
    %c0_i32_0 = arith.constant 0 : i32
    %c0_i32_1 = arith.constant 0 : i32
    return %c0_i32, %c0_i32_0 : i32, i32
  }
  func.func @transform_6(%arg0: i32) -> (i32, i32) {
    %c0_i32 = arith.constant 0 : i32
    %c0_i32_0 = arith.constant 0 : i32
    %c0_i32_1 = arith.constant 0 : i32
    return %c0_i32, %c0_i32_0 : i32, i32
  }
  func.func @transform_7(%arg0: i32) -> (i32, i32) {
    %c0_i32 = arith.constant 0 : i32
    %c0_i32_0 = arith.constant 0 : i32
    %c0_i32_1 = arith.constant 0 : i32
    return %c0_i32, %c0_i32_0 : i32, i32
  }
  func.func @transform_8(%arg0: i32) -> (i32, i32) {
    %c0_i32 = arith.constant 0 : i32
    %c0_i32_0 = arith.constant 0 : i32
    %c0_i32_1 = arith.constant 0 : i32
    return %c0_i32, %c0_i32_0 : i32, i32
  }
  func.func @transform_9(%arg0: i32) -> (i32, i32) {
    %c0_i32 = arith.constant 0 : i32
    %c0_i32_0 = arith.constant 0 : i32
    return %arg0, %c0_i32 : i32, i32
  }
  func.func @transform_10(%arg0: i32) -> (i32, i32) {
    %c0_i32 = arith.constant 0 : i32
    %c0_i32_0 = arith.constant 0 : i32
    return %arg0, %c0_i32 : i32, i32
  }
}

</mosaic_0001>

<bundles_post_ra>
// kernel: tpu_custom_call.1
= control target key start
LH: loop header
LB: loop body
LE: loop exit
PB: predicated region body
PF: predicated region fallthrough
CT: control target
= control target key end

     0   :  { %16 = vsyncpa [#allocation3], 0  ;;  %s1702_s0 = inlined_call_operand.hbm [shape: f32[16,32], index: 0, kind: input, shape index: {}]   ;;  %s1703_s1 = inlined_call_operand.vmem [shape: f32[32,64], index: 1, kind: input, shape index: {}]   ;;  %s1704_s2 = inlined_call_operand.vmem [shape: f32[1,64], index: 2, kind: input, shape index: {}]   ;;  %s1705_s3 = inlined_call_operand.vmem [shape: f32[64,128], index: 3, kind: input, shape index: {}]   ;;  %s1706_s4 = inlined_call_operand.vmem [shape: f32[1,128], index: 4, kind: input, shape index: {}]   ;;  %s1707_s5 = inlined_call_operand.vmem [shape: f32[64,32], index: 5, kind: input, shape index: {}]   ;;  %s1708_s6 = inlined_call_operand.vmem [shape: f32[1,32], index: 6, kind: input, shape index: {}]   ;;  %s1709_s7 = inlined_call_operand.hbm [shape: f32[32,32], index: 7, kind: input, shape index: {}]   ;;  %s1710_s8 = inlined_call_operand.vmem [shape: f32[1,32], index: 8, kind: input, shape index: {}]   ;;  %s1711_s9 = inlined_call_operand.hbm [shape: f32[16,32], index: 9, kind: output, shape index: {0}]   ;;  %s1712_s10 = inlined_call_operand.hbm [shape: f32[16,128], index: 10, kind: output, shape index: {1}]  }
   0x1   :  { %18 = vsyncpa [#allocation3 + $0x1], 0 }
   0x2   :  { %19 = vsyncpa [#allocation6], 0 }
   0x3   :  { %20 = vsyncpa [#allocation4], 0 }
   0x4   :  { %22 = vsyncpa [#allocation4 + $0x1], 0 }
   0x5   :  { %23 = vsyncpa [#allocation9], 0 }
   0x6   :  { %25 = vsyncpa [#allocation9 + $0x1], 0  ;;  %s1368_s13 = smov 0   ;;  %s1370_s14 = smov 0  }
   0x7   :  { %s1372_s15 = smov 0   ;;  %s1374_s16 = smov 0  }
   0x8 LB: > { %1720 = sst [smem:[#allocation14_spill]] %s1289_s13  ;;  %s1389_s17 = sadd.s32 4294967295, %s1301_s16   ;;  %s1301_s16 = sphi %s1374_s16, %s1738_s16   ;;  %s1297_s15 = sphi %s1372_s15, %s1741_s15   ;;  %s1293_s14 = sphi %s1370_s14, %s1740_s14   ;;  %s1289_s13 = sphi %s1368_s13, %s1739_s13  }
   0x9   : > { %s921_s18 = sadd.s32 4294967294, %s1301_s16   ;;  %p51_p0 = scmp.ne.s32.totalorder %s1293_s14, %s1289_s13 }
   0xa   : > { %p1715_p1 = scmp.eq.s32.totalorder %s1389_s17, 0  ;;  %p249_p3 = scmp.eq.s32.totalorder %s921_s18, 1 }
   0xb   : > { %p922_p5 = scmp.ge.s32.totalorder %s1301_s16, 1  ;;  %p282_p7 = scmp.lt.s32.totalorder %s1301_s16, 3 }
   0xc   : > { %p1398_p4 = por %p1715_p1, %p51_p0  ;;  %p1403_p6 = por %p249_p3, %p51_p0 }
   0xd   : > { %p1408_p8 = pnand %p922_p5, %p282_p7  ;;  %s1303_s22 = smov [#allocation5]  }
   0xe   : > { %s1721_s19 = scalar_select %p1398_p4, 1, 0 }
   0xf   : > { %s1722_s20 = scalar_select %p1403_p6, 1, 0 }
  0x10   : > { %s1724_s21 = scalar_select %p1408_p8, 1, 0 }
  0x11   : > { %1723 = sst [smem:[#allocation15_spill]] %s1722_s20  ;;  %s312_s23 = sshll.u32 %s1303_s22, 4  ;;  %s1412_s23 = int_to_ptr.vmem [resolvable:$true] %s312_s23 }
  0x12   : > { %p1083_p9 = pneg %p1408_p8  ;;  %s1424_s25 = sadd.s32 1, %s1301_s16  }
  0x13   : > { %1726 = sst [smem:[#allocation16_spill]] %s1424_s25  ;;  %s38_s26 = sadd.s32 1, %s1297_s15 }
  0x14   : > { %p1419_p11 = pnand %p1083_p9, %p1715_p1  ;;  %s35_s27 = ssub.s32 %s1301_s16, %s1424_s25 }
  0x15   : > { %s1141_s30 = scalar_lea.hbm %s1709_s7, 512 }
  0x16   : > { %p1142_p12 = scmp.ne.s32.totalorder %s1709_s7, %s1141_s30  ;;  %p1143_p13 = pneg %p1419_p11 }
  0x17   : > { %p1148_p5 = scmp.lt.u32.totalorder %s1141_s30, %s1709_s7 }
  0x18   : > { %p1144_p0 = pnand %p1143_p13, %p1142_p12 }
  0x1a   : > { %p1145_p3 = pneg %p1144_p0 }
  0x1c   : > { %p1150_p7 = pnand %p1148_p5, %p1145_p3 }
  0x1e   : > { %1153 = shalt.err (!%p1150_p7)
}
  0x1f   : > { %s1154_s25 = scalar_lea.vmem %s1412_s23, 512  ;;  %p1162_p2 = scmp.lt.s32.totalorder %s1412_s23, %s1412_s23 }
  0x20   : > { %p1155_p9 = scmp.ne.s32.totalorder %s1412_s23, %s1154_s25  ;;  %p1163_p6 = scmp.lt.s32.totalorder %s1154_s25, %s1154_s25 }
  0x22   : > { %p1157_p10 = pnand %p1155_p9, %p1143_p13  ;;  %p1164_p4 = por %p1163_p6, %p1162_p2 }
  0x24   : > { %p1158_p1 = pneg %p1157_p10 }
  0x26   : > { %p1165_p8 = pnand %p1164_p4, %p1158_p1 }
  0x28   : > { %1168 = shalt.err (!%p1165_p8)
}
  0x29   : > { %s1304_s28 = smov 128   ;;  %s1305_s29 = smov 8  }
  0x2a   : > { %1086 = dma.hbm_to_vmem [thread:$0]  (!%p1419_p11), %s1709_s7, 512, %s1412_s23, [#allocation6], %s1304_s28, %s1304_s28, %s1305_s29  }
  0x2b   : > { %p36_p2 = scmp.eq.s32.totalorder %s35_s27, 0  ;;  %p45_p1 = scmp.ne.s32.totalorder %s1297_s15, %s1293_s14 }
  0x2c   : > { %p46_p4 = scmp.eq.s32.totalorder %s1301_s16, 0  ;;  %p1099_p6 = scmp.lt.s32.totalorder %s1301_s16, 2 }
  0x2d   : > { %s1455_s25 = scalar_select %p36_p2, %s1297_s15, %s38_s26  }
  0x2e   : > { %p47_p8 = por %p46_p4, %p45_p1  ;;  %p1727_p10 = scmp.eq.s32.totalorder %s1389_s17, 1 }
  0x2f   : > { %s329_s18 = sand.u32 1, %s1297_s15   ;;  %s926_s22 = sshll.u32 %s1301_s16, 7 }
  0x30   : > { %p1459_p12 = por %p1727_p10, %p45_p1  ;;  %s925_s20 = sshll.u32 %s329_s18, 3 }
  0x31   : > { %s1468_s30 = scalar_lea.hbm %s1702_s0, %s926_s22  ;;  %s333_s23 = scalar_lea.vmem [#allocation2], %s925_s20 }
  0x32   : > { %s340_s26 = sshll.u32 %s333_s23, 4  ;;  %p1470_p11 = pnand %p1099_p6, %p47_p8  ;;  %s1474_s26 = int_to_ptr.vmem [resolvable:$true] %s340_s26 }
  0x33   : > { %s330_s28 = scalar_lea.sflag [#allocation3], %s329_s18  ;;  %s1169_s29 = scalar_lea.hbm %s1468_s30, 128 }
  0x34   : > { %p1170_p13 = scmp.ne.s32.totalorder %s1468_s30, %s1169_s29  ;;  %p1171_p0 = pneg %p1470_p11 }
  0x35   : > { %s1174_s11 = scalar_lea.hbm %s1702_s0, 256  ;;  %p1175_p7 = scmp.lt.u32.totalorder %s1468_s30, %s1702_s0 }
  0x36   : > { %p1172_p3 = pnand %p1171_p0, %p1170_p13  ;;  %p1176_p9 = scmp.lt.u32.totalorder %s1174_s11, %s1169_s29 }
  0x37   : > { %p1178_p1 = scmp.lt.u32.totalorder %s1169_s29, %s1468_s30 }
  0x38   : > { %p1173_p5 = pneg %p1172_p3  ;;  %p1177_p2 = por %p1176_p9, %p1175_p7 }
  0x3a   : > { %p1179_p4 = por %p1178_p1, %p1177_p2 }
  0x3c   : > { %p1180_p6 = pnand %p1179_p4, %p1173_p5 }
  0x3e   : > { %1183 = shalt.err (!%p1180_p6)
}
  0x3f   : > { %s1184_s18 = scalar_lea.vmem %s1474_s26, 128  ;;  %s1306_s23 = smov [#allocation2]  }
  0x40   : > { %p1185_p8 = scmp.ne.s32.totalorder %s1474_s26, %s1184_s18  ;;  %s1189_s13 = sshll.u32 %s1306_s23, 4  ;;  %s1190_s13 = int_to_ptr.vmem [resolvable:$false] %s1189_s13 }
  0x41   : > { %s1191_s20 = scalar_lea.vmem %s1190_s13, 256  ;;  %p1192_p3 = scmp.lt.s32.totalorder %s1474_s26, %s1190_s13 }
  0x42   : > { %p1187_p10 = pnand %p1185_p8, %p1171_p0  ;;  %p1193_p7 = scmp.lt.s32.totalorder %s1191_s20, %s1184_s18 }
  0x44   : > { %p1188_p13 = pneg %p1187_p10  ;;  %p1194_p9 = por %p1193_p7, %p1192_p3 }
  0x46   : > { %p1195_p2 = pnand %p1194_p9, %p1188_p13 }
  0x48   : > { %1198 = shalt.err (!%p1195_p2)
}
  0x49   : > { %1090 = dma.hbm_to_vmem [thread:$0]  (!%p1470_p11), %s1468_s30, 128, %s1474_s26, %s330_s28  }
  0x4a   : > { %p1730_p5 = scmp.ne.s32.totalorder %s1724_s21, 0 }
  0x4b   : > { %s1504_s29 = sand.u32 (!%p1730_p5), 1, %s1293_s14   ;;  %p1731_p0 = scmp.ne.s32.totalorder (!%p1730_p5), %s1721_s19, 0 }
  0x4c   : > { %349 = sbr.rel (%p1730_p5) target bundleno = 973 (0x3cd), region = 56  ;;  %s1507_s11 = sshll.u32 (!%p1730_p5), %s1504_s29, 3 }
  0x4d   : > { %s352_s22 = scalar_lea.sflag (!%p1730_p5), [#allocation3], %s1504_s29  ;;  %s355_s24 = scalar_lea.vmem (!%p1730_p5), [#allocation2], %s1507_s11 }
  0x53   : > { %1272 = dma.done.wait (%p1731_p0), %s352_s22, 128  }
  0x54   : > { %1274 = vsyncadd (%p1731_p0), %s352_s22, 4294967168  ;;  %p1732_p11 = scmp.eq.s32.totalorder %s1389_s17, 0 }
  0x56   : > { %1276 = dma.done.wait (%p1732_p11), [#allocation6], 512   ;;  %p1733_p1 = pmov %p1732_p11 }
  0x57   : > { %v1307_v0 = vmov 0.0|0.0   ;;  %vm1308_vm0 = vmmov 0   ;;  %v1309_v1 = vmov 0.0   ;;  %v402_v2 = vld [vmem:[%s1703_s1] sm:$0xff]  ;;  %v403_v3 = vld [vmem:[%s1703_s1 + $0x8] sm:$0xff]  ;;  %v404_v4 = vld [vmem:[%s1703_s1 + $0x10] sm:$0xff]  ;;  %v754_v38 = vlaneseq }
  0x58   : > { %1278 = vsyncadd (%p1733_p1), [#allocation6], 4294966784  ;;  %1035 = vmatprep.subr.bf16.mxu0 %v1307_v0  ;;  %983 = vmatprep.mubr.msk.f32.mxu0 %vm1308_vm0, %v1309_v1  ;;  %v1036_v5 = vpack.c.bf16 %v403_v3, %v402_v2  ;;  %v405_v6 = vld [vmem:[%s1703_s1 + $0x18] sm:$0xff]  ;;  %v488_v7 = vld [vmem:[%s1705_s3] sm:$0xff]  ;;  %vm413_vm1 = vcmask 261120   ;;  %vm503_vm2 = vcmask 523264  }
  0x59   : > { %1041 = vmatprep.subr.bf16.mxu1 %v1307_v0  ;;  %1002 = vmatprep.mubr.msk.f32.mxu1 %vm1308_vm0, %v1309_v1  ;;  %v489_v8 = vld [vmem:[%s1705_s3 + $0x8] sm:$0xff]  ;;  %v490_v9 = vld [vmem:[%s1705_s3 + $0x10] sm:$0xff]  ;;  %v491_v10 = vld [vmem:[%s1705_s3 + $0x18] sm:$0xff]  ;;  %v1039_v11 = vpack.c.bf16 %v405_v6, %v404_v4  ;;  %s940_s23 = sshll.u32 %s1389_s17, 3  ;;  %v755_v39 = vshrl.u32 %v754_v38, 7  ;;  %s1310_s22 = smov 64  }
  0x5a   : > { %1037 = vmatpush3.bf16.msra.mxu0 %v1036_v5  ;;  %v1042_v12 = vpack.c.bf16 %v489_v8, %v488_v7  ;;  %v1045_v13 = vpack.c.bf16 %v491_v10, %v490_v9  ;;  %v492_v14 = vld [vmem:[%s1705_s3 + $0x20] sm:$0xff]  ;;  %v493_v15 = vld [vmem:[%s1705_s3 + $0x28] sm:$0xff]  ;;  %v494_v18 = vld [vmem:[%s1705_s3 + $0x30] sm:$0xff]  ;;  %v756_v42 = vstv %s940_s23  ;;  %vm764_vm4 = vcmask 7168   ;;  %s400_s19 = scalar_lea.vmem [#allocation8], %s1507_s11  ;;  %s943_s26 = sshll.u32 %s1389_s17, 7 }
  0x5b   : > { %1038 = vmatprep.subr.bf16.mxu0 %v1307_v0  ;;  %v1557_v16 = vld [vmem:[%s355_s24] sm:$0xff]  ;;  %v1048_v17 = vpack.c.bf16 %v493_v15, %v492_v14  ;;  %v495_v19 = vld [vmem:[%s1705_s3 + $0x38] sm:$0xff]  ;;  %v579_v23 = vld [vmem:[%s1707_s5 + $0x10] sm:$0xff]  ;;  %v757_v45 = vadd.s32 %v756_v42, %v755_v39  ;;  %s809_s30 = sshll.u32 %s400_s19, 4  ;;  %s1623_s23 = scalar_lea.hbm %s1712_s10, %s943_s26  ;;  %s1616_s30 = int_to_ptr.vmem [resolvable:$true] %s809_s30 }
  0x5c   : > { %1043 = vmatpush3.bf16.msra.mxu1 %v1042_v12  ;;  %v1051_v20 = vpack.c.bf16 %v495_v19, %v494_v18  ;;  %v577_v21 = vld [vmem:[%s1707_s5] sm:$0xff]  ;;  %v578_v22 = vld [vmem:[%s1707_s5 + $0x8] sm:$0xff]  ;;  %v580_v25 = vld [vmem:[%s1707_s5 + $0x18] sm:$0xff]  ;;  %s783_s13 = scalar_lea.sflag [#allocation9], %s1504_s29  ;;  %s1199_s20 = scalar_lea.vmem %s1616_s30, 128 }
  0x5d   : > { %1044 = vmatprep.subr.bf16.mxu1 %v1307_v0  ;;  %v1054_v24 = vpack.c.bf16 %v578_v22, %v577_v21  ;;  %v1057_v26 = vpack.c.bf16 %v580_v25, %v579_v23  ;;  %v581_v27 = vld [vmem:[%s1707_s5 + $0x20] sm:$0xff]  ;;  %v582_v28 = vld [vmem:[%s1707_s5 + $0x28] sm:$0xff]  ;;  %v583_v35 = vld [vmem:[%s1707_s5 + $0x30] sm:$0xff]  ;;  %vm758_vm3 = vcmp.lt.s32.totalorder %v757_v45, 16  ;;  %p1200_p4 = scmp.ne.s32.totalorder %s1616_s30, %s1199_s20 }
  0x5e   : > { %1040 = vmatpush3.bf16.msra.mxu0 %v1039_v11  ;;  %v1060_v29 = vpack.c.bf16 %v582_v28, %v581_v27  ;;  %v932_v30 = vld [vmem:[%s1704_s2] ss:$0 sm:$0xff]  ;;  %v584_v36 = vld [vmem:[%s1707_s5 + $0x38] sm:$0xff]  ;;  %v666_v40 = vld [vmem:[#allocation5] sm:$0xff] }
  0x5f   : > { %1053 = vmatprep.subr.bf16.mxu0 %v1307_v0  ;;  %v1063_v37 = vpack.c.bf16 %v584_v36, %v583_v35  ;;  %v667_v41 = vld [vmem:[#allocation5 + $0x8] sm:$0xff]  ;;  %v934_v44 = vld [vmem:[%s1706_s4] ss:$0 sm:$0xff]  ;;  %v669_v52 = vld [vmem:[#allocation5 + $0x18] sm:$0xff]  ;;  %p1201_p6 = pnand %p1200_p4, %p1459_p12 }
  0x60   : > { %1046 = vmatpush3.bf16.msra.mxu1 %v1045_v13  ;;  %v1066_v43 = vpack.c.bf16 %v667_v41, %v666_v40  ;;  %v668_v51 = vld [vmem:[#allocation5 + $0x10] sm:$0xff] }
  0x61   : > { %984 = vmatmul.mubr.msk.f32.vlgmr.msra.gmra.mrb[0].mxu0 %vm413_vm1, %v1557_v16  ;;  %1047 = vmatprep.subr.bf16.mxu1 %v1307_v0  ;;  %v1069_v53 = vpack.c.bf16 %v669_v52, %v668_v51  ;;  %v936_v56 = vld [vmem:[%s1708_s6] ss:$0 sm:$0xff]  ;;  %p1202_p8 = pneg %p1201_p6 }
  0x62   : > { %1021 = vmatprep.mubr.msk.f32.mxu0 %vm1308_vm0, %v1309_v1  ;;  %1055 = vmatpush3.bf16.msra.mxu0 %v1054_v24 }
  0x63   : > { %1056 = vmatprep.subr.bf16.mxu0 %v1307_v0 }
  0x64   : > { %1049 = vmatpush3.bf16.msra.mxu1 %v1048_v17 }
  0x65   : > { %1050 = vmatprep.subr.bf16.mxu1 %v1307_v0 }
  0x66   : > { %1058 = vmatpush3.bf16.msra.mxu0 %v1057_v26 }
  0x67   : > { %1059 = vmatprep.subr.bf16.mxu0 %v1307_v0 }
  0x68   : > { %1052 = vmatpush3.bf16.msra.mxu1 %v1051_v20 }
  0x69   : > { %1065 = vmatprep.subr.bf16.mxu1 %v1307_v0 }
  0x6a   : > { %1061 = vmatpush3.bf16.msra.mxu0 %v1060_v29 }
  0x6b   : > { %1062 = vmatprep.subr.bf16.mxu0 %v1307_v0 }
  0x6e   : > { %1064 = vmatpush3.bf16.msra.mxu0 %v1063_v37 }
 0x134   : > { %v483_v31 = vpop.f32.mrb[0].mxu0 }
 0x135   : > { %v484_v32 = vadd.f32 %v932_v30, %v483_v31  ;;  %v985_v33 = vpop.f32.mrb[1].mxu0 }
 0x137   : > { %v487_v34 = vmax.f32 %v484_v32, 0.0 }
 0x139   : > { %1003 = vmatmul.mubr.msk.f32.vlgmr.msra.gmra.mrb[0].mxu1 %vm503_vm2, %v487_v34 }
 0x13a   : > { %1032 = vmatprep.mubr.msk.f32.mxu1 %vm1308_vm0, %v1309_v1  ;;  %1067 = vmatpush3.bf16.msra.mxu1 %v1066_v43 }
 0x13b   : > { %1068 = vmatprep.subr.bf16.mxu1 %v1307_v0 }
 0x13e   : > { %1070 = vmatpush3.bf16.msra.mxu1 %v1069_v53 }
 0x20c   : > { %v573_v46 = vpop.f32.mrb[0].mxu1 }
 0x20d   : > { %v574_v47 = vadd.f32 %v934_v44, %v573_v46  ;;  %v1004_v48 = vpop.f32.mrb[1].mxu1 }
 0x20f   : > { %1022 = vmatmul.mubr.msk.f32.vlgmr.msra.gmra.mrb[2].mxu0 %vm503_vm2, %v574_v47  ;;  %v752_v49 = vmax.f32 %v574_v47, 0.0 }
 0x211   : > { %v759_v50 = vsel %vm758_vm3, %v752_v49, 0.0 }
 0x212   : > { %761 = vrot.lane.b32.xlu0 %v759_v50, %s1310_s22  ;;  %s1311_s22 = smov [#allocation8]  }
 0x213   : > { %s1203_s24 = sshll.u32 %s1311_s22, 4  ;;  %s1204_s24 = int_to_ptr.vmem [resolvable:$false] %s1203_s24 }
 0x214   : > { %s1205_s21 = scalar_lea.vmem %s1204_s24, 256  ;;  %p1206_p10 = scmp.lt.s32.totalorder %s1616_s30, %s1204_s24 }
 0x215   : > { %p1207_p13 = scmp.lt.s32.totalorder %s1205_s21, %s1199_s20 }
 0x217   : > { %p1208_p3 = por %p1207_p13, %p1206_p10 }
 0x219   : > { %p1209_p7 = pnand %p1208_p3, %p1202_p8 }
 0x284   : > { %v762_v54 = vpop.permute.xlu0 %761 }
 0x285   : > { %v765_v55 = vsel %vm764_vm4, %v762_v54, 0.0 }
 0x286   : > { %766 = vadd.xlane.f32.xlu0 %v765_v55 }
 0x2e2   : > { %v661_v57 = vpop.f32.mrb[2].mxu0 }
 0x2e3   : > { %v662_v58 = vadd.f32 %v936_v56, %v661_v57  ;;  %v1023_v59 = vpop.f32.mrb[3].mxu0 }
 0x2e5   : > { %v665_v60 = vmax.f32 %v662_v58, 0.0 }
 0x2e7   : > { %1033 = vmatmul.mubr.msk.f32.vlgmr.msra.gmra.mrb[2].mxu1 %vm413_vm1, %v665_v60 }
 0x313   : > { %v767_v61 = vpop.xlane.xlu0 %766 }
 0x314   : > { %v768_v62 = vrot.slane %v767_v61, 4 }
 0x316   : > { %v769_v63 = vadd.f32 %v768_v62, %v767_v61 }
 0x318   : > { %v770_v0 = vrot.slane %v769_v63, 2 }
 0x31a   : > { %v771_v1 = vadd.f32 %v770_v0, %v769_v63 }
 0x31c   : > { %v772_v2 = vrot.slane %v771_v1, 1 }
 0x31e   : > { %v773_v3 = vadd.f32 %v772_v2, %v771_v1 }
 0x320   : > { %1071 = vpush %v773_v3 }
 0x351   : > { %s1072_s27 = spop %1071 }
 0x352   : > { %v775_v4 = vstv %s1072_s27 }
 0x353   : > { %776 = vst [vmem:[%s400_s19] sm:$0xff] %v775_v4 }
 0x354   : > { %1212 = shalt.err (!%p1209_p7)
}
 0x355   : > { %s1213_s19 = scalar_lea.hbm %s1623_s23, 128  ;;  %s1217_s18 = scalar_lea.hbm %s1712_s10, 256 }
 0x356   : > { %p1214_p9 = scmp.ne.s32.totalorder %s1623_s23, %s1213_s19  ;;  %p1218_p0 = scmp.lt.u32.totalorder %s1623_s23, %s1712_s10 }
 0x357   : > { %p1219_p11 = scmp.lt.u32.totalorder %s1217_s18, %s1213_s19  ;;  %p1221_p4 = scmp.lt.u32.totalorder %s1213_s19, %s1623_s23 }
 0x358   : > { %p1215_p2 = pnand %p1214_p9, %p1459_p12 }
 0x359   : > { %p1220_p1 = por %p1219_p11, %p1218_p0 }
 0x35a   : > { %p1216_p5 = pneg %p1215_p2 }
 0x35b   : > { %p1222_p6 = por %p1221_p4, %p1220_p1 }
 0x35d   : > { %p1223_p8 = pnand %p1222_p6, %p1216_p5 }
 0x35f   : > { %1226 = shalt.err (!%p1223_p8)
}
 0x360   : > { %1080 = dma.vmem_to_hbm [thread:$0]  (%p1459_p12), %s1616_s30, 128, %s1623_s23, %s783_s13   ;;  %v938_v5 = vld [vmem:[%s1710_s8] ss:$0 sm:$0xff] }
 0x361   : > { %s393_s27 = scalar_lea.vmem [#allocation7], %s1507_s11  ;;  %s1657_s22 = scalar_lea.hbm %s1711_s9, %s943_s26 }
 0x362   : > { %s796_s28 = sshll.u32 %s393_s27, 4  ;;  %s778_s30 = scalar_lea.sflag [#allocation4], %s1504_s29  ;;  %s1659_s28 = int_to_ptr.vmem [resolvable:$true] %s796_s28 }
 0x363   : > { %s1227_s11 = scalar_lea.vmem %s1659_s28, 128  ;;  %s1312_s23 = smov [#allocation7]  }
 0x364   : > { %p1228_p10 = scmp.ne.s32.totalorder %s1659_s28, %s1227_s11  ;;  %s1231_s17 = sshll.u32 %s1312_s23, 4  ;;  %s1232_s17 = int_to_ptr.vmem [resolvable:$false] %s1231_s17 }
 0x365   : > { %s1233_s13 = scalar_lea.vmem %s1232_s17, 256  ;;  %p1234_p7 = scmp.lt.s32.totalorder %s1659_s28, %s1232_s17 }
 0x366   : > { %p1229_p13 = pnand %p1228_p10, %p1459_p12  ;;  %p1235_p9 = scmp.lt.s32.totalorder %s1233_s13, %s1227_s11 }
 0x368   : > { %p1230_p3 = pneg %p1229_p13  ;;  %p1236_p2 = por %p1235_p9, %p1234_p7 }
 0x36a   : > { %p1237_p5 = pnand %p1236_p2, %p1230_p3 }
 0x3ba   : > { %v746_v6 = vpop.f32.mrb[2].mxu1 }
 0x3bb   : > { %v747_v7 = vadd.f32 %v938_v5, %v746_v6  ;;  %v1034_v8 = vpop.f32.mrb[3].mxu1 }
 0x3bd   : > { %v750_v9 = vadd.f32 %v747_v7, %v1557_v16 }
 0x3bf   : > { %751 = vst.msk [vmem:[%s393_s27] sm:$0xff] %vm413_vm1, %v750_v9 }
 0x3c0   : > { %1240 = shalt.err (!%p1237_p5)
}
 0x3c1   : > { %s1241_s29 = scalar_lea.hbm %s1657_s22, 128  ;;  %s1245_s20 = scalar_lea.hbm %s1711_s9, 256 }
 0x3c2   : > { %p1242_p0 = scmp.ne.s32.totalorder %s1657_s22, %s1241_s29  ;;  %p1246_p4 = scmp.lt.u32.totalorder %s1657_s22, %s1711_s9 }
 0x3c3   : > { %p1247_p6 = scmp.lt.u32.totalorder %s1245_s20, %s1241_s29  ;;  %p1249_p10 = scmp.lt.u32.totalorder %s1241_s29, %s1657_s22 }
 0x3c4   : > { %p1243_p11 = pnand %p1242_p0, %p1459_p12 }
 0x3c5   : > { %p1248_p8 = por %p1247_p6, %p1246_p4 }
 0x3c6   : > { %p1244_p1 = pneg %p1243_p11 }
 0x3c7   : > { %p1250_p13 = por %p1249_p10, %p1248_p8 }
 0x3c9   : > { %p1251_p3 = pnand %p1250_p13, %p1244_p1 }
 0x3cb   : > { %1254 = shalt.err (!%p1251_p3)
}
 0x3cc   : > { %1079 = dma.vmem_to_hbm [thread:$0]  (%p1459_p12), %s1659_s28, 128, %s1657_s22, %s778_s30  }
 0x3cd PF: > { %s1734_s19 = sld [smem:[#allocation14_spill]]  ;;  %s1735_s18 = sld [smem:[#allocation15_spill]] }
 0x3ce   : > { %p1737_p9 = scmp.ge.s32.totalorder %s1301_s16, 2 }
 0x3d3   : > { %s821_s11 = sand.u32 1, %s1734_s19   ;;  %p1736_p7 = scmp.ne.s32.totalorder %s1735_s18, 0 }
 0x3d4   : > { %s822_s23 = scalar_lea.sflag [#allocation4], %s821_s11 }
 0x3d5   : > { %p1092_p2 = pnand %p1737_p9, %p1736_p7 }
 0x3d7   : > { %1280 = dma.done.wait (!%p1092_p2), %s822_s23, 128  }
 0x3d8   : > { %1282 = vsyncadd (!%p1092_p2), %s822_s23, 4294967168  ;;  %s831_s17 = scalar_lea.sflag [#allocation9], %s821_s11 }
 0x3d9   : > { %1284 = dma.done.wait (!%p1092_p2), %s831_s17, 128  }
 0x3da   : > { %1286 = vsyncadd (!%p1092_p2), %s831_s17, 4294967168  ;;  %s1738_s16 = sld [smem:[#allocation16_spill]]  ;;  %s1739_s13 = smov %s1293_s14 }
 0x3db   : > { %s1740_s14 = smov %s1297_s15  ;;  %s1741_s15 = smov %s1455_s25 }
 0x3e0   : > { %p28_p12 = scmp.ge.s32.totalorder %s1738_s16, 4  }
 0x3e2   :  { %30 = sbr.rel (!%p28_p12) target bundleno = 8 (0x8), region = 122 }
 0x3e9   :  { %836 = vsyncpa [#allocation3], 1 }
 0x3ea   :  { %838 = vsyncpa [#allocation3 + $0x1], 1 }
 0x3eb   :  { %839 = vsyncpa [#allocation6], 1 }
 0x3ec   :  { %840 = vsyncpa [#allocation4], 1 }
 0x3ed   :  { %842 = vsyncpa [#allocation4 + $0x1], 1 }
 0x3ee   :  { %843 = vsyncpa [#allocation9], 1 }
 0x3ef   :  { %845 = vsyncpa [#allocation9 + $0x1], 1 }

</bundles_post_ra>
